<compile_context>
chip_gen: v7x
topology: tpu7x:2x2x1
jax: 0.10.0
libtpu: 0.0.40
codegen_flags: <defaults>
</compile_context>

<pallas_src>
import functools

import jax
import jax.numpy as jnp
from jax.experimental import pallas as pl
from jax.experimental.pallas import tpu as pltpu


# --------------------------- fused inconv kernel -----------------------------

def _inconv_kernel(x_ref, w1_ref, b1_ref, w2_ref, b2_ref, o_ref, mid_ref,
                   *, H, W, circular):
    """One batch element per grid step.

    x_ref  : (H+2, W+2, Cin)   padded input (halo built by the wrapper)
    w1_ref : (9, Cin, Cout)    conv1 weights, BN0/BN1 folded in
    b1_ref : (1, Cout)
    w2_ref : (9, Cout, Cout)   conv2 weights, BN2 folded in
    b2_ref : (1, Cout)
    o_ref  : (H, W, Cout)      output (NHWC slice for this batch element)
    mid_ref: (H+2, W+2, Cout)  VMEM scratch: padded conv1 activation
    """
    Wp = W + 2
    Cout = o_ref.shape[-1]
    f32 = jnp.float32

    # conv2's H zero-padding rows (conv1 writes rows 1..H below).
    mid_ref[0] = jnp.zeros((Wp, Cout), f32)
    mid_ref[H + 1] = jnp.zeros((Wp, Cout), f32)

    def conv_row(load_row, w_ref, b_ref, h):
        # 3x3 conv for one output row: 9 accumulated MXU matmuls, f32 acc.
        acc = jnp.zeros((W, Cout), f32)
        for dh in range(3):
            row = load_row(h + dh)                      # (Wp, C_src)
            for dw in range(3):
                acc = acc + jnp.dot(row[dw:dw + W, :],
                                    w_ref[dh * 3 + dw],
                                    preferred_element_type=f32)
        return jnp.maximum(acc + b_ref[...], 0.0)       # bias + ReLU epilogue

    def conv1_body(h, carry):
        z = conv_row(lambda r: x_ref[r], w1_ref, b1_ref, h)   # (W, Cout)
        if circular:                                          # rebuild W halo on-chip
            left, right = z[W - 1:W, :], z[0:1, :]
        else:
            left = jnp.zeros((1, Cout), f32)
            right = left
        mid_ref[h + 1] = jnp.concatenate([left, z, right], axis=0)  # (Wp, Cout)
        return carry

    def conv2_body(h, carry):
        z = conv_row(lambda r: mid_ref[r], w2_ref, b2_ref, h)
        o_ref[h] = z.astype(o_ref.dtype)
        return carry

    jax.lax.fori_loop(0, H, conv1_body, 0)
    jax.lax.fori_loop(0, H, conv2_body, 0)


# ------------------------------- wrapper --------------------------------------

def _bn_scale_shift(bn, eps):
    gamma, beta, mean, var = bn
    s = gamma / jnp.sqrt(var + eps)
    t = beta - mean * s
    return s, t


@functools.partial(jax.jit, static_argnames=("circular_padding", "input_batch_norm"))
def inconv_forward(x, params, *, circular_padding=True, input_batch_norm=True,
                   eps=1e-5):
    """inconv forward (eval mode).  x: (B, Cin, H, W) NCHW.  Returns NHWC."""
    B, Cin, H, W = x.shape
    w1, b1 = params["w1"], params["b1"]          # PyTorch layout (Cout, Cin, 3, 3)
    w2, b2 = params["w2"], params["b2"]          # (Cout, Cout, 3, 3)
    Cout = w1.shape[0]

    s1, t1 = _bn_scale_shift(params["bn1"], eps)
    s2, t2 = _bn_scale_shift(params["bn2"], eps)
    if input_batch_norm:
        s0, t0 = _bn_scale_shift(params["bn0"], eps)
    else:
        s0 = jnp.ones((Cin,), jnp.float32)
        t0 = jnp.zeros((Cin,), jnp.float32)
    # Pad value that the folded input-BN maps to zero (assumes BN0 gamma != 0).
    pad_val = -t0 / s0

    # Fold BN0 (input side) + BN1 (output side) into conv1, BN2 into conv2.
    w1_t = jnp.transpose(w1, (2, 3, 1, 0)).reshape(9, Cin, Cout)     # (tap, ci, co)
    w1_eff = w1_t * s0[None, :, None] * s1[None, None, :]
    b1_eff = (b1 + jnp.einsum("kio,i->o", w1_t, t0)) * s1 + t1
    w2_t = jnp.transpose(w2, (2, 3, 1, 0)).reshape(9, Cout, Cout)
    w2_eff = w2_t * s2[None, None, :]
    b2_eff = b2 * s2 + t2

    # NCHW -> NHWC, then build the conv1 halo: circular (or pad_val) along W,
    # pad_val rows along H.
    xh = jnp.transpose(x, (0, 2, 3, 1))                               # (B,H,W,Cin)
    if circular_padding:
        xw = jnp.concatenate([xh[:, :, -1:, :], xh, xh[:, :, :1, :]], axis=2)
    else:
        col = jnp.broadcast_to(pad_val, (B, H, 1, Cin)).astype(xh.dtype)
        xw = jnp.concatenate([col, xh, col], axis=2)
    row = jnp.broadcast_to(pad_val, (B, 1, W + 2, Cin)).astype(xh.dtype)
    xp = jnp.concatenate([row, xw, row], axis=1)                      # (B,H+2,W+2,Cin)

    Hp, Wp = H + 2, W + 2
    kernel = functools.partial(_inconv_kernel, H=H, W=W, circular=circular_padding)

    out = pl.pallas_call(
        kernel,
        out_shape=jax.ShapeDtypeStruct((B, H, W, Cout), x.dtype),
        grid_spec=pltpu.PrefetchScalarGridSpec(
            num_scalar_prefetch=0,
            grid=(B,),
            in_specs=[
                pl.BlockSpec((None, Hp, Wp, Cin), lambda b: (b, 0, 0, 0)),
                pl.BlockSpec((9, Cin, Cout), lambda b: (0, 0, 0)),
                pl.BlockSpec((1, Cout), lambda b: (0, 0)),
                pl.BlockSpec((9, Cout, Cout), lambda b: (0, 0, 0)),
                pl.BlockSpec((1, Cout), lambda b: (0, 0)),
            ],
            out_specs=pl.BlockSpec((None, H, W, Cout), lambda b: (b, 0, 0, 0)),
            scratch_shapes=[pltpu.VMEM((Hp, Wp, Cout), jnp.float32)],
        ),
        compiler_params=pltpu.CompilerParams(
            dimension_semantics=("parallel",)),
    )(xp, w1_eff, b1_eff.reshape(1, Cout), w2_eff, b2_eff.reshape(1, Cout))
    return out                                                        # (B,H,W,Cout)


# ---------------------- pure-JAX reference (PyTorch eval) ---------------------

def _ref_inconv(x, params, circular_padding, input_batch_norm, eps=1e-5):
    def bn(h, p):
        g, b, m, v = p
        s = g / jnp.sqrt(v + eps)
        t = b - m * s
        return h * s[None, :, None, None] + t[None, :, None, None]

    def conv(h, w, b):
        if circular_padding:
            h = jnp.concatenate([h[..., -1:], h, h[..., :1]], axis=-1)
            pad = ((1, 1), (0, 0))
        else:
            pad = ((1, 1), (1, 1))
        y = jax.lax.conv_general_dilated(
            h, w, window_strides=(1, 1), padding=pad,
            dimension_numbers=("NCHW", "OIHW", "NCHW"),
            precision=jax.lax.Precision.HIGHEST)
        return y + b[None, :, None, None]

    h = x
    if input_batch_norm:
        h = bn(h, params["bn0"])
    h = jax.nn.relu(bn(conv(h, params["w1"], params["b1"]), params["bn1"]))
    h = jax.nn.relu(bn(conv(h, params["w2"], params["b2"]), params["bn2"]))
    return h


# ------------------------------ demo / self-check -----------------------------

if __name__ == "__main__":
    key = jax.random.PRNGKey(0)
    B, in_ch, out_ch, H, W = 2, 8, 32, 16, 16
    circular_padding = True
    input_batch_norm = True

    keys = jax.random.split(key, 8)

    def bn_params(k, c):
        k1, k2, k3, k4 = jax.random.split(k, 4)
        gamma = jax.random.uniform(k1, (c,), minval=0.5, maxval=1.5)
        beta = jax.random.normal(k2, (c,)) * 0.3
        mean = jax.random.normal(k3, (c,)) * 0.3
        var = jax.random.uniform(k4, (c,), minval=0.5, maxval=1.5)
        return (gamma, beta, mean, var)

    x = jax.random.normal(keys[0], (B, in_ch, H, W), dtype=jnp.float32)
    params = {
        "w1": jax.random.normal(keys[1], (out_ch, in_ch, 3, 3), jnp.float32) * 0.2,
        "b1": jax.random.normal(keys[2], (out_ch,), jnp.float32) * 0.2,
        "w2": jax.random.normal(keys[3], (out_ch, out_ch, 3, 3), jnp.float32) * 0.1,
        "b2": jax.random.normal(keys[4], (out_ch,), jnp.float32) * 0.2,
        "bn0": bn_params(keys[5], in_ch),
        "bn1": bn_params(keys[6], out_ch),
        "bn2": bn_params(keys[7], out_ch),
    }

    out = inconv_forward(x, params, circular_padding=circular_padding,
                         input_batch_norm=input_batch_norm)
    out = jax.block_until_ready(out)                       # (B, H, W, out_ch) NHWC

    ref = _ref_inconv(x, params, circular_padding, input_batch_norm)   # NCHW
    ref_nhwc = jnp.transpose(ref, (0, 2, 3, 1))
    assert out.shape == ref_nhwc.shape, (out.shape, ref_nhwc.shape)
    max_err = float(jnp.max(jnp.abs(out - ref_nhwc)))
    # Tolerance allows for MXU f32 accumulation-order / multi-pass differences.
    assert bool(jnp.allclose(out, ref_nhwc, atol=2e-2, rtol=1e-2)), \
        f"Pallas result does not match reference (max abs err {max_err})"
    print("KERNEL_OK")
</pallas_src>

<mosaic_0001>
module attributes {stable_mosaic.version = 11 : i64} {
  func.func @_inconv_kernel(%arg0: i32, %arg1: memref<1x18x18x8xf32, #tpu.memory_space<vmem>>, %arg2: memref<9x8x32xf32, #tpu.memory_space<vmem>>, %arg3: memref<1x32xf32, #tpu.memory_space<vmem>>, %arg4: memref<9x32x32xf32, #tpu.memory_space<vmem>>, %arg5: memref<1x32xf32, #tpu.memory_space<vmem>>, %arg6: memref<1x16x16x32xf32, #tpu.memory_space<vmem>>, %arg7: memref<18x18x32xf32, #tpu.memory_space<vmem>>) attributes {dimension_semantics = [#tpu.dimension_semantics<parallel>], iteration_bounds = array<i64: 2>, scalar_prefetch = 0 : i64, scratch_operands = 1 : i64, tpu.core_type = #tpu.core_type<tc>, window_params = [{transform_indices = @transform_0, window_bounds = array<i64: 1, 18, 18, 8>}, {pipeline_mode = #tpu.pipeline_mode<synchronous>, transform_indices = @transform_1, window_bounds = array<i64: 9, 8, 32>}, {pipeline_mode = #tpu.pipeline_mode<synchronous>, transform_indices = @transform_2, window_bounds = array<i64: 1, 32>}, {pipeline_mode = #tpu.pipeline_mode<synchronous>, transform_indices = @transform_3, window_bounds = array<i64: 9, 32, 32>}, {pipeline_mode = #tpu.pipeline_mode<synchronous>, transform_indices = @transform_4, window_bounds = array<i64: 1, 32>}, {transform_indices = @transform_5, window_bounds = array<i64: 1, 16, 16, 32>}]} {
    %cst = arith.constant 0.000000e+00 : f32
    %0 = vector.broadcast %cst : f32 to vector<18x32xf32>
    %c0 = arith.constant 0 : index
    %c0_0 = arith.constant 0 : index
    %c0_1 = arith.constant 0 : index
    %1 = vector.load %arg7[%c0, %c0_0, %c0_1] : memref<18x18x32xf32, #tpu.memory_space<vmem>>, vector<1x18x32xf32>
    %2 = vector.shape_cast %1 : vector<1x18x32xf32> to vector<18x32xf32>
    %3 = vector.shape_cast %0 : vector<18x32xf32> to vector<1x18x32xf32>
    tpu.vector_store %arg7[%c0, %c0_0, %c0_1], %3 {strides = array<i32>} : memref<18x18x32xf32, #tpu.memory_space<vmem>>, vector<1x18x32xf32>,
    %cst_2 = arith.constant 0.000000e+00 : f32
    %4 = vector.broadcast %cst_2 : f32 to vector<18x32xf32>
    %c17 = arith.constant 17 : index
    %c0_3 = arith.constant 0 : index
    %c0_4 = arith.constant 0 : index
    %5 = vector.load %arg7[%c17, %c0_3, %c0_4] : memref<18x18x32xf32, #tpu.memory_space<vmem>>, vector<1x18x32xf32>
    %6 = vector.shape_cast %5 : vector<1x18x32xf32> to vector<18x32xf32>
    %7 = vector.shape_cast %4 : vector<18x32xf32> to vector<1x18x32xf32>
    tpu.vector_store %arg7[%c17, %c0_3, %c0_4], %7 {strides = array<i32>} : memref<18x18x32xf32, #tpu.memory_space<vmem>>, vector<1x18x32xf32>,
    %c0_i32 = arith.constant 0 : i32
    %c16_i32 = arith.constant 16 : i32
    %8 = arith.addi %c0_i32, %c16_i32 : i32
    %c1_i32 = arith.constant 1 : i32
    scf.for %arg8 = %c0_i32 to %8 step %c1_i32  : i32 {
      %cst_10 = arith.constant 0.000000e+00 : f32
      %10 = vector.broadcast %cst_10 : f32 to vector<16x32xf32>
      %c0_i32_11 = arith.constant 0 : i32
      %11 = arith.addi %arg8, %c0_i32_11 : i32
      %c0_12 = arith.constant 0 : index
      %12 = arith.index_cast %11 : i32 to index
      %c0_13 = arith.constant 0 : index
      %c0_14 = arith.constant 0 : index
      %13 = vector.load %arg1[%c0_12, %12, %c0_13, %c0_14] : memref<1x18x18x8xf32, #tpu.memory_space<vmem>>, vector<1x1x18x8xf32>
      %14 = vector.shape_cast %13 : vector<1x1x18x8xf32> to vector<18x8xf32>
      %15 = vector.extract_strided_slice %14 {offsets = [0, 0], sizes = [16, 8], strides = [1, 1]} : vector<18x8xf32> to vector<16x8xf32>
      %c0_15 = arith.constant 0 : index
      %c0_16 = arith.constant 0 : index
      %c0_17 = arith.constant 0 : index
      %16 = vector.load %arg2[%c0_15, %c0_16, %c0_17] : memref<9x8x32xf32, #tpu.memory_space<vmem>>, vector<1x8x32xf32>
      %17 = vector.shape_cast %16 : vector<1x8x32xf32> to vector<8x32xf32>
      %cst_18 = arith.constant dense<0.000000e+00> : vector<16x32xf32>
      %18 = tpu.matmul %15, %17, %cst_18 {dimension_numbers = #tpu.dot_dimension_numbers<[1], [0], [0], [1], [0, 0, 1, 1], [], []>} : vector<16x8xf32>, vector<8x32xf32>, vector<16x32xf32> -> vector<16x32xf32>
      %19 = arith.addf %10, %18 : vector<16x32xf32>
      %20 = vector.extract_strided_slice %14 {offsets = [1, 0], sizes = [16, 8], strides = [1, 1]} : vector<18x8xf32> to vector<16x8xf32>
      %c1 = arith.constant 1 : index
      %c0_19 = arith.constant 0 : index
      %c0_20 = arith.constant 0 : index
      %21 = vector.load %arg2[%c1, %c0_19, %c0_20] : memref<9x8x32xf32, #tpu.memory_space<vmem>>, vector<1x8x32xf32>
      %22 = vector.shape_cast %21 : vector<1x8x32xf32> to vector<8x32xf32>
      %cst_21 = arith.constant dense<0.000000e+00> : vector<16x32xf32>
      %23 = tpu.matmul %20, %22, %cst_21 {dimension_numbers = #tpu.dot_dimension_numbers<[1], [0], [0], [1], [0, 0, 1, 1], [], []>} : vector<16x8xf32>, vector<8x32xf32>, vector<16x32xf32> -> vector<16x32xf32>
      %24 = arith.addf %19, %23 : vector<16x32xf32>
      %25 = vector.extract_strided_slice %14 {offsets = [2, 0], sizes = [16, 8], strides = [1, 1]} : vector<18x8xf32> to vector<16x8xf32>
      %c2 = arith.constant 2 : index
      %c0_22 = arith.constant 0 : index
      %c0_23 = arith.constant 0 : index
      %26 = vector.load %arg2[%c2, %c0_22, %c0_23] : memref<9x8x32xf32, #tpu.memory_space<vmem>>, vector<1x8x32xf32>
      %27 = vector.shape_cast %26 : vector<1x8x32xf32> to vector<8x32xf32>
      %cst_24 = arith.constant dense<0.000000e+00> : vector<16x32xf32>
      %28 = tpu.matmul %25, %27, %cst_24 {dimension_numbers = #tpu.dot_dimension_numbers<[1], [0], [0], [1], [0, 0, 1, 1], [], []>} : vector<16x8xf32>, vector<8x32xf32>, vector<16x32xf32> -> vector<16x32xf32>
      %29 = arith.addf %24, %28 : vector<16x32xf32>
      %c1_i32_25 = arith.constant 1 : i32
      %30 = arith.addi %arg8, %c1_i32_25 : i32
      %c0_26 = arith.constant 0 : index
      %31 = arith.index_cast %30 : i32 to index
      %c0_27 = arith.constant 0 : index
      %c0_28 = arith.constant 0 : index
      %32 = vector.load %arg1[%c0_26, %31, %c0_27, %c0_28] : memref<1x18x18x8xf32, #tpu.memory_space<vmem>>, vector<1x1x18x8xf32>
      %33 = vector.shape_cast %32 : vector<1x1x18x8xf32> to vector<18x8xf32>
      %34 = vector.extract_strided_slice %33 {offsets = [0, 0], sizes = [16, 8], strides = [1, 1]} : vector<18x8xf32> to vector<16x8xf32>
      %c3 = arith.constant 3 : index
      %c0_29 = arith.constant 0 : index
      %c0_30 = arith.constant 0 : index
      %35 = vector.load %arg2[%c3, %c0_29, %c0_30] : memref<9x8x32xf32, #tpu.memory_space<vmem>>, vector<1x8x32xf32>
      %36 = vector.shape_cast %35 : vector<1x8x32xf32> to vector<8x32xf32>
      %cst_31 = arith.constant dense<0.000000e+00> : vector<16x32xf32>
      %37 = tpu.matmul %34, %36, %cst_31 {dimension_numbers = #tpu.dot_dimension_numbers<[1], [0], [0], [1], [0, 0, 1, 1], [], []>} : vector<16x8xf32>, vector<8x32xf32>, vector<16x32xf32> -> vector<16x32xf32>
      %38 = arith.addf %29, %37 : vector<16x32xf32>
      %39 = vector.extract_strided_slice %33 {offsets = [1, 0], sizes = [16, 8], strides = [1, 1]} : vector<18x8xf32> to vector<16x8xf32>
      %c4 = arith.constant 4 : index
      %c0_32 = arith.constant 0 : index
      %c0_33 = arith.constant 0 : index
      %40 = vector.load %arg2[%c4, %c0_32, %c0_33] : memref<9x8x32xf32, #tpu.memory_space<vmem>>, vector<1x8x32xf32>
      %41 = vector.shape_cast %40 : vector<1x8x32xf32> to vector<8x32xf32>
      %cst_34 = arith.constant dense<0.000000e+00> : vector<16x32xf32>
      %42 = tpu.matmul %39, %41, %cst_34 {dimension_numbers = #tpu.dot_dimension_numbers<[1], [0], [0], [1], [0, 0, 1, 1], [], []>} : vector<16x8xf32>, vector<8x32xf32>, vector<16x32xf32> -> vector<16x32xf32>
      %43 = arith.addf %38, %42 : vector<16x32xf32>
      %44 = vector.extract_strided_slice %33 {offsets = [2, 0], sizes = [16, 8], strides = [1, 1]} : vector<18x8xf32> to vector<16x8xf32>
      %c5 = arith.constant 5 : index
      %c0_35 = arith.constant 0 : index
      %c0_36 = arith.constant 0 : index
      %45 = vector.load %arg2[%c5, %c0_35, %c0_36] : memref<9x8x32xf32, #tpu.memory_space<vmem>>, vector<1x8x32xf32>
      %46 = vector.shape_cast %45 : vector<1x8x32xf32> to vector<8x32xf32>
      %cst_37 = arith.constant dense<0.000000e+00> : vector<16x32xf32>
      %47 = tpu.matmul %44, %46, %cst_37 {dimension_numbers = #tpu.dot_dimension_numbers<[1], [0], [0], [1], [0, 0, 1, 1], [], []>} : vector<16x8xf32>, vector<8x32xf32>, vector<16x32xf32> -> vector<16x32xf32>
      %48 = arith.addf %43, %47 : vector<16x32xf32>
      %c2_i32 = arith.constant 2 : i32
      %49 = arith.addi %arg8, %c2_i32 : i32
      %c0_38 = arith.constant 0 : index
      %50 = arith.index_cast %49 : i32 to index
      %c0_39 = arith.constant 0 : index
      %c0_40 = arith.constant 0 : index
      %51 = vector.load %arg1[%c0_38, %50, %c0_39, %c0_40] : memref<1x18x18x8xf32, #tpu.memory_space<vmem>>, vector<1x1x18x8xf32>
      %52 = vector.shape_cast %51 : vector<1x1x18x8xf32> to vector<18x8xf32>
      %53 = vector.extract_strided_slice %52 {offsets = [0, 0], sizes = [16, 8], strides = [1, 1]} : vector<18x8xf32> to vector<16x8xf32>
      %c6 = arith.constant 6 : index
      %c0_41 = arith.constant 0 : index
      %c0_42 = arith.constant 0 : index
      %54 = vector.load %arg2[%c6, %c0_41, %c0_42] : memref<9x8x32xf32, #tpu.memory_space<vmem>>, vector<1x8x32xf32>
      %55 = vector.shape_cast %54 : vector<1x8x32xf32> to vector<8x32xf32>
      %cst_43 = arith.constant dense<0.000000e+00> : vector<16x32xf32>
      %56 = tpu.matmul %53, %55, %cst_43 {dimension_numbers = #tpu.dot_dimension_numbers<[1], [0], [0], [1], [0, 0, 1, 1], [], []>} : vector<16x8xf32>, vector<8x32xf32>, vector<16x32xf32> -> vector<16x32xf32>
      %57 = arith.addf %48, %56 : vector<16x32xf32>
      %58 = vector.extract_strided_slice %52 {offsets = [1, 0], sizes = [16, 8], strides = [1, 1]} : vector<18x8xf32> to vector<16x8xf32>
      %c7 = arith.constant 7 : index
      %c0_44 = arith.constant 0 : index
      %c0_45 = arith.constant 0 : index
      %59 = vector.load %arg2[%c7, %c0_44, %c0_45] : memref<9x8x32xf32, #tpu.memory_space<vmem>>, vector<1x8x32xf32>
      %60 = vector.shape_cast %59 : vector<1x8x32xf32> to vector<8x32xf32>
      %cst_46 = arith.constant dense<0.000000e+00> : vector<16x32xf32>
      %61 = tpu.matmul %58, %60, %cst_46 {dimension_numbers = #tpu.dot_dimension_numbers<[1], [0], [0], [1], [0, 0, 1, 1], [], []>} : vector<16x8xf32>, vector<8x32xf32>, vector<16x32xf32> -> vector<16x32xf32>
      %62 = arith.addf %57, %61 : vector<16x32xf32>
      %63 = vector.extract_strided_slice %52 {offsets = [2, 0], sizes = [16, 8], strides = [1, 1]} : vector<18x8xf32> to vector<16x8xf32>
      %c8 = arith.constant 8 : index
      %c0_47 = arith.constant 0 : index
      %c0_48 = arith.constant 0 : index
      %64 = vector.load %arg2[%c8, %c0_47, %c0_48] : memref<9x8x32xf32, #tpu.memory_space<vmem>>, vector<1x8x32xf32>
      %65 = vector.shape_cast %64 : vector<1x8x32xf32> to vector<8x32xf32>
      %cst_49 = arith.constant dense<0.000000e+00> : vector<16x32xf32>
      %66 = tpu.matmul %63, %65, %cst_49 {dimension_numbers = #tpu.dot_dimension_numbers<[1], [0], [0], [1], [0, 0, 1, 1], [], []>} : vector<16x8xf32>, vector<8x32xf32>, vector<16x32xf32> -> vector<16x32xf32>
      %67 = arith.addf %62, %66 : vector<16x32xf32>
      %c0_50 = arith.constant 0 : index
      %c0_51 = arith.constant 0 : index
      %68 = vector.load %arg3[%c0_50, %c0_51] : memref<1x32xf32, #tpu.memory_space<vmem>>, vector<1x32xf32>
      %69 = vector.broadcast %68 : vector<1x32xf32> to vector<16x32xf32>
      %70 = arith.addf %67, %69 : vector<16x32xf32>
      %cst_52 = arith.constant 0.000000e+00 : f32
      %71 = vector.broadcast %cst_52 : f32 to vector<16x32xf32>
      %72 = arith.maximumf %70, %71 : vector<16x32xf32>
      %73 = vector.extract_strided_slice %72 {offsets = [15, 0], sizes = [1, 32], strides = [1, 1]} : vector<16x32xf32> to vector<1x32xf32>
      %74 = vector.extract_strided_slice %72 {offsets = [0, 0], sizes = [1, 32], strides = [1, 1]} : vector<16x32xf32> to vector<1x32xf32>
      %75 = tpu.concatenate %73, %72, %74 in 0 : vector<1x32xf32>, vector<16x32xf32>, vector<1x32xf32> -> vector<18x32xf32>
      %c1_i32_53 = arith.constant 1 : i32
      %76 = arith.addi %arg8, %c1_i32_53 : i32
      %77 = arith.index_cast %76 : i32 to index
      %c0_54 = arith.constant 0 : index
      %c0_55 = arith.constant 0 : index
      %78 = vector.load %arg7[%77, %c0_54, %c0_55] : memref<18x18x32xf32, #tpu.memory_space<vmem>>, vector<1x18x32xf32>
      %79 = vector.shape_cast %78 : vector<1x18x32xf32> to vector<18x32xf32>
      %80 = vector.shape_cast %75 : vector<18x32xf32> to vector<1x18x32xf32>
      tpu.vector_store %arg7[%77, %c0_54, %c0_55], %80 {strides = array<i32>} : memref<18x18x32xf32, #tpu.memory_space<vmem>>, vector<1x18x32xf32>,
    }
    %c16_i32_5 = arith.constant 16 : i32
    %c0_i32_6 = arith.constant 0 : i32
    %c16_i32_7 = arith.constant 16 : i32
    %9 = arith.addi %c0_i32_6, %c16_i32_7 : i32
    %c1_i32_8 = arith.constant 1 : i32
    scf.for %arg8 = %c0_i32_6 to %9 step %c1_i32_8  : i32 {
      %cst_10 = arith.constant 0.000000e+00 : f32
      %10 = vector.broadcast %cst_10 : f32 to vector<16x32xf32>
      %c0_i32_11 = arith.constant 0 : i32
      %11 = arith.addi %arg8, %c0_i32_11 : i32
      %12 = arith.index_cast %11 : i32 to index
      %c0_12 = arith.constant 0 : index
      %c0_13 = arith.constant 0 : index
      %13 = vector.load %arg7[%12, %c0_12, %c0_13] : memref<18x18x32xf32, #tpu.memory_space<vmem>>, vector<1x18x32xf32>
      %14 = vector.shape_cast %13 : vector<1x18x32xf32> to vector<18x32xf32>
      %15 = vector.extract_strided_slice %14 {offsets = [0, 0], sizes = [16, 32], strides = [1, 1]} : vector<18x32xf32> to vector<16x32xf32>
      %c0_14 = arith.constant 0 : index
      %c0_15 = arith.constant 0 : index
      %c0_16 = arith.constant 0 : index
      %16 = vector.load %arg4[%c0_14, %c0_15, %c0_16] : memref<9x32x32xf32, #tpu.memory_space<vmem>>, vector<1x32x32xf32>
      %17 = vector.shape_cast %16 : vector<1x32x32xf32> to vector<32x32xf32>
      %cst_17 = arith.constant dense<0.000000e+00> : vector<16x32xf32>
      %18 = tpu.matmul %15, %17, %cst_17 {dimension_numbers = #tpu.dot_dimension_numbers<[1], [0], [0], [1], [0, 0, 1, 1], [], []>} : vector<16x32xf32>, vector<32x32xf32>, vector<16x32xf32> -> vector<16x32xf32>
      %19 = arith.addf %10, %18 : vector<16x32xf32>
      %20 = vector.extract_strided_slice %14 {offsets = [1, 0], sizes = [16, 32], strides = [1, 1]} : vector<18x32xf32> to vector<16x32xf32>
      %c1 = arith.constant 1 : index
      %c0_18 = arith.constant 0 : index
      %c0_19 = arith.constant 0 : index
      %21 = vector.load %arg4[%c1, %c0_18, %c0_19] : memref<9x32x32xf32, #tpu.memory_space<vmem>>, vector<1x32x32xf32>
      %22 = vector.shape_cast %21 : vector<1x32x32xf32> to vector<32x32xf32>
      %cst_20 = arith.constant dense<0.000000e+00> : vector<16x32xf32>
      %23 = tpu.matmul %20, %22, %cst_20 {dimension_numbers = #tpu.dot_dimension_numbers<[1], [0], [0], [1], [0, 0, 1, 1], [], []>} : vector<16x32xf32>, vector<32x32xf32>, vector<16x32xf32> -> vector<16x32xf32>
      %24 = arith.addf %19, %23 : vector<16x32xf32>
      %25 = vector.extract_strided_slice %14 {offsets = [2, 0], sizes = [16, 32], strides = [1, 1]} : vector<18x32xf32> to vector<16x32xf32>
      %c2 = arith.constant 2 : index
      %c0_21 = arith.constant 0 : index
      %c0_22 = arith.constant 0 : index
      %26 = vector.load %arg4[%c2, %c0_21, %c0_22] : memref<9x32x32xf32, #tpu.memory_space<vmem>>, vector<1x32x32xf32>
      %27 = vector.shape_cast %26 : vector<1x32x32xf32> to vector<32x32xf32>
      %cst_23 = arith.constant dense<0.000000e+00> : vector<16x32xf32>
      %28 = tpu.matmul %25, %27, %cst_23 {dimension_numbers = #tpu.dot_dimension_numbers<[1], [0], [0], [1], [0, 0, 1, 1], [], []>} : vector<16x32xf32>, vector<32x32xf32>, vector<16x32xf32> -> vector<16x32xf32>
      %29 = arith.addf %24, %28 : vector<16x32xf32>
      %c1_i32_24 = arith.constant 1 : i32
      %30 = arith.addi %arg8, %c1_i32_24 : i32
      %31 = arith.index_cast %30 : i32 to index
      %c0_25 = arith.constant 0 : index
      %c0_26 = arith.constant 0 : index
      %32 = vector.load %arg7[%31, %c0_25, %c0_26] : memref<18x18x32xf32, #tpu.memory_space<vmem>>, vector<1x18x32xf32>
      %33 = vector.shape_cast %32 : vector<1x18x32xf32> to vector<18x32xf32>
      %34 = vector.extract_strided_slice %33 {offsets = [0, 0], sizes = [16, 32], strides = [1, 1]} : vector<18x32xf32> to vector<16x32xf32>
      %c3 = arith.constant 3 : index
      %c0_27 = arith.constant 0 : index
      %c0_28 = arith.constant 0 : index
      %35 = vector.load %arg4[%c3, %c0_27, %c0_28] : memref<9x32x32xf32, #tpu.memory_space<vmem>>, vector<1x32x32xf32>
      %36 = vector.shape_cast %35 : vector<1x32x32xf32> to vector<32x32xf32>
      %cst_29 = arith.constant dense<0.000000e+00> : vector<16x32xf32>
      %37 = tpu.matmul %34, %36, %cst_29 {dimension_numbers = #tpu.dot_dimension_numbers<[1], [0], [0], [1], [0, 0, 1, 1], [], []>} : vector<16x32xf32>, vector<32x32xf32>, vector<16x32xf32> -> vector<16x32xf32>
      %38 = arith.addf %29, %37 : vector<16x32xf32>
      %39 = vector.extract_strided_slice %33 {offsets = [1, 0], sizes = [16, 32], strides = [1, 1]} : vector<18x32xf32> to vector<16x32xf32>
      %c4 = arith.constant 4 : index
      %c0_30 = arith.constant 0 : index
      %c0_31 = arith.constant 0 : index
      %40 = vector.load %arg4[%c4, %c0_30, %c0_31] : memref<9x32x32xf32, #tpu.memory_space<vmem>>, vector<1x32x32xf32>
      %41 = vector.shape_cast %40 : vector<1x32x32xf32> to vector<32x32xf32>
      %cst_32 = arith.constant dense<0.000000e+00> : vector<16x32xf32>
      %42 = tpu.matmul %39, %41, %cst_32 {dimension_numbers = #tpu.dot_dimension_numbers<[1], [0], [0], [1], [0, 0, 1, 1], [], []>} : vector<16x32xf32>, vector<32x32xf32>, vector<16x32xf32> -> vector<16x32xf32>
      %43 = arith.addf %38, %42 : vector<16x32xf32>
      %44 = vector.extract_strided_slice %33 {offsets = [2, 0], sizes = [16, 32], strides = [1, 1]} : vector<18x32xf32> to vector<16x32xf32>
      %c5 = arith.constant 5 : index
      %c0_33 = arith.constant 0 : index
      %c0_34 = arith.constant 0 : index
      %45 = vector.load %arg4[%c5, %c0_33, %c0_34] : memref<9x32x32xf32, #tpu.memory_space<vmem>>, vector<1x32x32xf32>
      %46 = vector.shape_cast %45 : vector<1x32x32xf32> to vector<32x32xf32>
      %cst_35 = arith.constant dense<0.000000e+00> : vector<16x32xf32>
      %47 = tpu.matmul %44, %46, %cst_35 {dimension_numbers = #tpu.dot_dimension_numbers<[1], [0], [0], [1], [0, 0, 1, 1], [], []>} : vector<16x32xf32>, vector<32x32xf32>, vector<16x32xf32> -> vector<16x32xf32>
      %48 = arith.addf %43, %47 : vector<16x32xf32>
      %c2_i32 = arith.constant 2 : i32
      %49 = arith.addi %arg8, %c2_i32 : i32
      %50 = arith.index_cast %49 : i32 to index
      %c0_36 = arith.constant 0 : index
      %c0_37 = arith.constant 0 : index
      %51 = vector.load %arg7[%50, %c0_36, %c0_37] : memref<18x18x32xf32, #tpu.memory_space<vmem>>, vector<1x18x32xf32>
      %52 = vector.shape_cast %51 : vector<1x18x32xf32> to vector<18x32xf32>
      %53 = vector.extract_strided_slice %52 {offsets = [0, 0], sizes = [16, 32], strides = [1, 1]} : vector<18x32xf32> to vector<16x32xf32>
      %c6 = arith.constant 6 : index
      %c0_38 = arith.constant 0 : index
      %c0_39 = arith.constant 0 : index
      %54 = vector.load %arg4[%c6, %c0_38, %c0_39] : memref<9x32x32xf32, #tpu.memory_space<vmem>>, vector<1x32x32xf32>
      %55 = vector.shape_cast %54 : vector<1x32x32xf32> to vector<32x32xf32>
      %cst_40 = arith.constant dense<0.000000e+00> : vector<16x32xf32>
      %56 = tpu.matmul %53, %55, %cst_40 {dimension_numbers = #tpu.dot_dimension_numbers<[1], [0], [0], [1], [0, 0, 1, 1], [], []>} : vector<16x32xf32>, vector<32x32xf32>, vector<16x32xf32> -> vector<16x32xf32>
      %57 = arith.addf %48, %56 : vector<16x32xf32>
      %58 = vector.extract_strided_slice %52 {offsets = [1, 0], sizes = [16, 32], strides = [1, 1]} : vector<18x32xf32> to vector<16x32xf32>
      %c7 = arith.constant 7 : index
      %c0_41 = arith.constant 0 : index
      %c0_42 = arith.constant 0 : index
      %59 = vector.load %arg4[%c7, %c0_41, %c0_42] : memref<9x32x32xf32, #tpu.memory_space<vmem>>, vector<1x32x32xf32>
      %60 = vector.shape_cast %59 : vector<1x32x32xf32> to vector<32x32xf32>
      %cst_43 = arith.constant dense<0.000000e+00> : vector<16x32xf32>
      %61 = tpu.matmul %58, %60, %cst_43 {dimension_numbers = #tpu.dot_dimension_numbers<[1], [0], [0], [1], [0, 0, 1, 1], [], []>} : vector<16x32xf32>, vector<32x32xf32>, vector<16x32xf32> -> vector<16x32xf32>
      %62 = arith.addf %57, %61 : vector<16x32xf32>
      %63 = vector.extract_strided_slice %52 {offsets = [2, 0], sizes = [16, 32], strides = [1, 1]} : vector<18x32xf32> to vector<16x32xf32>
      %c8 = arith.constant 8 : index
      %c0_44 = arith.constant 0 : index
      %c0_45 = arith.constant 0 : index
      %64 = vector.load %arg4[%c8, %c0_44, %c0_45] : memref<9x32x32xf32, #tpu.memory_space<vmem>>, vector<1x32x32xf32>
      %65 = vector.shape_cast %64 : vector<1x32x32xf32> to vector<32x32xf32>
      %cst_46 = arith.constant dense<0.000000e+00> : vector<16x32xf32>
      %66 = tpu.matmul %63, %65, %cst_46 {dimension_numbers = #tpu.dot_dimension_numbers<[1], [0], [0], [1], [0, 0, 1, 1], [], []>} : vector<16x32xf32>, vector<32x32xf32>, vector<16x32xf32> -> vector<16x32xf32>
      %67 = arith.addf %62, %66 : vector<16x32xf32>
      %c0_47 = arith.constant 0 : index
      %c0_48 = arith.constant 0 : index
      %68 = vector.load %arg5[%c0_47, %c0_48] : memref<1x32xf32, #tpu.memory_space<vmem>>, vector<1x32xf32>
      %69 = vector.broadcast %68 : vector<1x32xf32> to vector<16x32xf32>
      %70 = arith.addf %67, %69 : vector<16x32xf32>
      %cst_49 = arith.constant 0.000000e+00 : f32
      %71 = vector.broadcast %cst_49 : f32 to vector<16x32xf32>
      %72 = arith.maximumf %70, %71 : vector<16x32xf32>
      %c0_50 = arith.constant 0 : index
      %73 = arith.index_cast %arg8 : i32 to index
      %c0_51 = arith.constant 0 : index
      %c0_52 = arith.constant 0 : index
      %74 = vector.load %arg6[%c0_50, %73, %c0_51, %c0_52] : memref<1x16x16x32xf32, #tpu.memory_space<vmem>>, vector<1x1x16x32xf32>
      %75 = vector.shape_cast %74 : vector<1x1x16x32xf32> to vector<16x32xf32>
      %76 = vector.shape_cast %72 : vector<16x32xf32> to vector<1x1x16x32xf32>
      tpu.vector_store %arg6[%c0_50, %73, %c0_51, %c0_52], %76 {strides = array<i32>} : memref<1x16x16x32xf32, #tpu.memory_space<vmem>>, vector<1x1x16x32xf32>,
    }
    %c16_i32_9 = arith.constant 16 : i32
    return
  }
  func.func @transform_0(%arg0: i32) -> (i32, i32, i32, i32) {
    %c0_i32 = arith.constant 0 : i32
    %c0_i32_0 = arith.constant 0 : i32
    %c0_i32_1 = arith.constant 0 : i32
    %c0_i32_2 = arith.constant 0 : i32
    return %arg0, %c0_i32, %c0_i32_0, %c0_i32_1 : i32, i32, i32, i32
  }
  func.func @transform_1(%arg0: i32) -> (i32, i32, i32) {
    %c0_i32 = arith.constant 0 : i32
    %c0_i32_0 = arith.constant 0 : i32
    %c0_i32_1 = arith.constant 0 : i32
    %c0_i32_2 = arith.constant 0 : i32
    return %c0_i32, %c0_i32_0, %c0_i32_1 : i32, i32, i32
  }
  func.func @transform_2(%arg0: i32) -> (i32, i32) {
    %c0_i32 = arith.constant 0 : i32
    %c0_i32_0 = arith.constant 0 : i32
    %c0_i32_1 = arith.constant 0 : i32
    return %c0_i32, %c0_i32_0 : i32, i32
  }
  func.func @transform_3(%arg0: i32) -> (i32, i32, i32) {
    %c0_i32 = arith.constant 0 : i32
    %c0_i32_0 = arith.constant 0 : i32
    %c0_i32_1 = arith.constant 0 : i32
    %c0_i32_2 = arith.constant 0 : i32
    return %c0_i32, %c0_i32_0, %c0_i32_1 : i32, i32, i32
  }
  func.func @transform_4(%arg0: i32) -> (i32, i32) {
    %c0_i32 = arith.constant 0 : i32
    %c0_i32_0 = arith.constant 0 : i32
    %c0_i32_1 = arith.constant 0 : i32
    return %c0_i32, %c0_i32_0 : i32, i32
  }
  func.func @transform_5(%arg0: i32) -> (i32, i32, i32, i32) {
    %c0_i32 = arith.constant 0 : i32
    %c0_i32_0 = arith.constant 0 : i32
    %c0_i32_1 = arith.constant 0 : i32
    %c0_i32_2 = arith.constant 0 : i32
    return %arg0, %c0_i32, %c0_i32_0, %c0_i32_1 : i32, i32, i32, i32
  }
}

</mosaic_0001>

<bundles_post_ra>
// kernel: inconv_forward.1
= control target key start
LH: loop header
LB: loop body
LE: loop exit
PB: predicated region body
PF: predicated region fallthrough
CT: control target
= control target key end

     0   :  { %10 = vsyncpa [#allocation4], 0  ;;  %s3030_s0 = inlined_call_operand.vmem [shape: f32[2,18,18,8], index: 0, kind: input, shape index: {}]   ;;  %s3031_s1 = inlined_call_operand.vmem [shape: f32[9,8,32], index: 1, kind: input, shape index: {}]   ;;  %s3032_s2 = inlined_call_operand.vmem [shape: f32[1,32], index: 2, kind: input, shape index: {}]   ;;  %s3033_s3 = inlined_call_operand.vmem [shape: f32[9,32,32], index: 3, kind: input, shape index: {}]   ;;  %s3034_s4 = inlined_call_operand.vmem [shape: f32[1,32], index: 4, kind: input, shape index: {}]   ;;  %s3035_s5 = inlined_call_operand.hbm [shape: f32[2,16,16,32], index: 5, kind: output, shape index: {}]  }
   0x1   :  { %12 = vsyncpa [#allocation4 + $0x1], 0  ;;  %s2627_s18 = smov 0   ;;  %s2629_s19 = smov 0  }
   0x2   :  { %s2631_s20 = smov 0   ;;  %s2633_s21 = smov 0  }
   0x3 LB: > { %s2648_s22 = sadd.s32 4294967295, %s2583_s21   ;;  %s2019_s23 = sadd.s32 4294967294, %s2583_s21   ;;  %s2583_s21 = sphi %s2633_s21, %s3041_s21   ;;  %s2579_s20 = sphi %s2631_s20, %s3040_s20   ;;  %s2575_s19 = sphi %s2629_s19, %s3039_s19   ;;  %s2571_s18 = sphi %s2627_s18, %s3038_s18  }
   0x4   : > { %s2652_s24 = sadd.s32 1, %s2583_s21   ;;  %s135_s25 = sadd.s32 1, %s2579_s20 }
   0x5   : > { %s132_s26 = ssub.s32 %s2583_s21, %s2652_s24  ;;  %p145_p0 = scmp.ne.s32.totalorder %s2579_s20, %s2575_s19 }
   0x6   : > { %p133_p1 = scmp.eq.s32.totalorder %s132_s26, 0  ;;  %p146_p2 = scmp.eq.s32.totalorder %s2648_s22, 1 }
   0x7   : > { %p151_p3 = scmp.ne.s32.totalorder %s2575_s19, %s2571_s18  ;;  %p152_p4 = scmp.eq.s32.totalorder %s2019_s23, 1 }
   0x8   : > { %s2663_s27 = scalar_select %p133_p1, %s2579_s20, %s135_s25  }
   0x9   : > { %p2665_p5 = por %p146_p2, %p145_p0  ;;  %p2669_p6 = por %p152_p4, %p151_p3 }
   0xa   : > { %p2022_p7 = scmp.ge.s32.totalorder %s2583_s21, 1  ;;  %p190_p8 = scmp.lt.s32.totalorder %s2583_s21, 3 }
   0xc   : > { %p191_p9 = pnand %p2022_p7, %p190_p8 }
   0xd   : > { %s215_s30 = sand.u32 (!%p191_p9), 1, %s2575_s19   ;;  %p218_p10 = scmp.lt.s32.totalorder (!%p191_p9), %s2648_s22, 1  ;;  %vm223_vm0 = vcmask (!%p191_p9), 261120   ;;  %vm226_vm1 = vcmask (!%p191_p9), 254976   ;;  %v2593_v0 = vmov (!%p191_p9), 0.0  }
   0xe   : > { %194 = sbr.rel (%p191_p9) target bundleno = 569 (0x239), region = 40  ;;  %s2679_s6 = sshll.u32 (!%p191_p9), %s215_s30, 8  ;;  %224 = vst.msk [vmem:[#allocation2] sm:$0xff] (!%p191_p9), %vm223_vm0, %v2593_v0  ;;  %225 = vst.msk [vmem:[#allocation2 + $0x8] sm:$0xff] (!%p191_p9), %vm223_vm0, %v2593_v0 }
   0xf   : > { %229 = vst.msk [vmem:[#allocation2 + $0x198] sm:$0xff] (!%p191_p9), %vm223_vm0, %v2593_v0  ;;  %230 = vst.msk [vmem:[#allocation2 + $0x1a0] sm:$0xff] (!%p191_p9), %vm223_vm0, %v2593_v0  ;;  %s217_s12 = scalar_lea.vmem (!%p191_p9), [#allocation3], %s2679_s6  ;;  %s2694_s13 = smov (!%p191_p9), 0  }
  0x10   : > { %227 = vst.msk [vmem:[#allocation2 + $0x10] sm:$0x3] (!%p191_p9), %vm226_vm1, %v2593_v0  ;;  %231 = vst.msk [vmem:[#allocation2 + $0x1a8] sm:$0x3] (!%p191_p9), %vm226_vm1, %v2593_v0 }
  0x15   : > { %s219_s7 = scalar_select %p218_p10, %s2648_s22, 1 }
  0x17   : > { %s2454_s8 = smul.u32 432, %s219_s7 }
  0x19   : > { %s2691_s11 = scalar_lea.vmem %s3030_s0, %s2454_s8 }
  0x1a LB: >> { %v2039_v1 = vld [vmem:[%s3031_s1 + $0x20] sm:$0xff]  ;;  %v2025_v2 = vld [vmem:[%s3031_s1 + $0x8] sm:$0xff]  ;;  %s238_s8 = smul.u32 24, %s2587_s13  ;;  %vm249_vm2 = vcmask 1046528   ;;  %vm255_vm3 = vcmask 64512   ;;  %vm416_vm4 = vcmask 1045504   ;;  %s2587_s13 = sphi %s2694_s13, %s237_s13  }
  0x1b   : >> { %v2042_v3 = vld [vmem:[%s3031_s1 + $0x28] sm:$0xff]  ;;  %2226 = vmatprep.subr.mxu0 %v2039_v1  ;;  %2206 = vmatprep.subr.mxu1 %v2025_v2  ;;  %v243_v4 = vld [vmem:[%s3031_s1] sm:$0xff]  ;;  %v2048_v24 = vld [vmem:[%s3031_s1 + $0x30] sm:$0xff]  ;;  %vm1054_vm5 = vcmask 1040384   ;;  %s237_s13 = sadd.s32 1, %s2587_s13  }
  0x1c   : >> { %2227 = vmatpush3.msra.mxu0 %v2039_v1  ;;  %2207 = vmatpush3.msra.mxu1 %v2025_v2  ;;  %s2715_s9 = scalar_lea.vmem %s2691_s11, %s238_s8  ;;  %v2030_v25 = vld [vmem:[%s3031_s1 + $0x10] sm:$0xff]  ;;  %v2051_v32 = vld [vmem:[%s3031_s1 + $0x38] sm:$0xff]  ;;  %v2054_v41 = vld [vmem:[%s3031_s1 + $0x40] sm:$0xff]  ;;  %s1968_s15 = scalar_lea.vmem [#allocation2], %s238_s8 }
  0x1d   : >> { %2231 = vmatprep.subr.mxu0 %v2042_v3  ;;  %2211 = vmatprep.subr.mxu1 %v243_v4  ;;  %v240_v5 = vld [vmem:[%s2715_s9] sm:$0xff]  ;;  %v241_v6 = vld [vmem:[%s2715_s9 + $0x8] sm:$0xff]  ;;  %v2033_v7 = vld [vmem:[%s2715_s9 + $0x18] sm:$0xff]  ;;  %p234_p11 = scmp.ge.s32.totalorder %s237_s13, 16  }
  0x1e   : >> { %v250_v8 = vrot.slane %v240_v5, 1  ;;  %v251_v9 = vrot.slane %v241_v6, 1  ;;  %v2721_v10 = vld [vmem:[%s2715_s9 + $0x20] sm:$0xff]  ;;  %v597_v11 = vrot.slane %v2033_v7, 1  ;;  %v242_v12 = vld [vmem:[%s2715_s9 + $0x10] sm:$0x3] }
  0x1f   : >> { %v598_v13 = vrot.slane %v2721_v10, 1  ;;  %v253_v14 = vrot.slane %v242_v12, 1  ;;  %v2035_v15 = vld [vmem:[%s2715_s9 + $0x28] sm:$0x3]  ;;  %v685_v16 = vrot.slane %v2033_v7, 2  ;;  %v686_v19 = vrot.slane %v2721_v10, 2 }
  0x20   : >> { %v252_v17 = vsel %vm249_vm2, %v250_v8, %v251_v9  ;;  %v600_v18 = vrot.slane %v2035_v15, 1  ;;  %v688_v26 = vrot.slane %v2035_v15, 2  ;;  %v417_v27 = vrot.slane %v240_v5, 2  ;;  %v2045_v31 = vld [vmem:[%s2715_s9 + $0x30] sm:$0xff]  ;;  %v2036_v34 = vld [vmem:[%s3031_s1 + $0x18] sm:$0xff]  ;;  %s2787_s16 = smov (%p234_p11), 0  }
  0x21   : >> { %2208 = vmatprep.mubr.msk.f32.mxu1 %vm255_vm3, %v252_v17  ;;  %v599_v20 = vsel %vm249_vm2, %v597_v11, %v598_v13  ;;  %v254_v21 = vsel %vm249_vm2, %v251_v9, %v253_v14  ;;  %v687_v23 = vsel %vm416_vm4, %v685_v16, %v686_v19  ;;  %v418_v28 = vrot.slane %v241_v6, 2  ;;  %v2046_v35 = vld [vmem:[%s2715_s9 + $0x38] sm:$0xff]  ;;  %v2047_v39 = vld [vmem:[%s2715_s9 + $0x40] sm:$0x3] }
  0x22   : >> { %2228 = vmatprep.mubr.msk.f32.mxu0 %vm255_vm3, %v599_v20  ;;  %2209 = vmatmul.mubr.msk.f32.vlgmr.msra.gmra.mrb[0].mxu1 %vm255_vm3, %v254_v21  ;;  %v601_v22 = vsel %vm249_vm2, %v598_v13, %v600_v18  ;;  %v689_v29 = vsel %vm416_vm4, %v686_v19, %v688_v26  ;;  %v420_v33 = vrot.slane %v242_v12, 2  ;;  %v865_v36 = vrot.slane %v2045_v31, 1  ;;  %v2057_v52 = vld [vmem:[%s3032_s2] ss:$0 sm:$0xff] }
  0x23   : >> { %2229 = vmatmul.mubr.msk.f32.vlgmr.msra.gmra.mrb[0].mxu0 %vm255_vm3, %v601_v22  ;;  %2212 = vmatpush3.msra.mxu1 %v243_v4  ;;  %v419_v30 = vsel %vm416_vm4, %v417_v27, %v418_v28  ;;  %v866_v37 = vrot.slane %v2046_v35, 1  ;;  %v868_v42 = vrot.slane %v2047_v39, 1  ;;  %v953_v43 = vrot.slane %v2045_v31, 2 }
  0x24   : >> { %2232 = vmatpush3.msra.mxu0 %v2042_v3  ;;  %2213 = vmatprep.mubr.msk.f32.mxu1 %vm255_vm3, %v240_v5  ;;  %v421_v38 = vsel %vm416_vm4, %v418_v28, %v420_v33  ;;  %v954_v44 = vrot.slane %v2046_v35, 2  ;;  %v956_v47 = vrot.slane %v2047_v39, 2 }
  0x25   : >> { %2233 = vmatprep.mubr.msk.f32.mxu0 %vm255_vm3, %v687_v23  ;;  %2236 = vmatprep.subr.mxu0 %v2048_v24  ;;  %v867_v40 = vsel %vm249_vm2, %v865_v36, %v866_v37  ;;  %v869_v45 = vsel %vm249_vm2, %v866_v37, %v868_v42 }
  0x26   : >> { %2216 = vmatprep.subr.mxu1 %v2030_v25  ;;  %v955_v46 = vsel %vm416_vm4, %v953_v43, %v954_v44  ;;  %v957_v48 = vsel %vm416_vm4, %v954_v44, %v956_v47 }
  0x2a   : >> { %2214 = vmatmul.mubr.msk.f32.vlgmr.msra.gmra.mrb[0].mxu1 %vm255_vm3, %v241_v6 }
  0x2b   : >> { %2234 = vmatmul.mubr.msk.f32.vlgmr.msra.gmra.mrb[0].mxu0 %vm255_vm3, %v689_v29  ;;  %2217 = vmatpush3.msra.mxu1 %v2030_v25 }
  0x2c   : >> { %2237 = vmatpush3.msra.mxu0 %v2048_v24  ;;  %2218 = vmatprep.mubr.msk.f32.mxu1 %vm255_vm3, %v419_v30 }
  0x2d   : >> { %2238 = vmatprep.mubr.msk.f32.mxu0 %vm255_vm3, %v2045_v31  ;;  %2241 = vmatprep.subr.mxu0 %v2051_v32 }
  0x2e   : >> { %2221 = vmatprep.subr.mxu1 %v2036_v34 }
  0x32   : >> { %2219 = vmatmul.mubr.msk.f32.vlgmr.msra.gmra.mrb[0].mxu1 %vm255_vm3, %v421_v38 }
  0x33   : >> { %2239 = vmatmul.mubr.msk.f32.vlgmr.msra.gmra.mrb[0].mxu0 %vm255_vm3, %v2046_v35  ;;  %2222 = vmatpush3.msra.mxu1 %v2036_v34 }
  0x34   : >> { %2242 = vmatpush3.msra.mxu0 %v2051_v32  ;;  %2223 = vmatprep.mubr.msk.f32.mxu1 %vm255_vm3, %v2033_v7 }
  0x35   : >> { %2243 = vmatprep.mubr.msk.f32.mxu0 %vm255_vm3, %v867_v40  ;;  %2246 = vmatprep.subr.mxu0 %v2054_v41 }
  0x3a   : >> { %2224 = vmatmul.mubr.msk.f32.vlgmr.msra.gmra.mrb[0].mxu1 %vm255_vm3, %v2721_v10 }
  0x3b   : >> { %2244 = vmatmul.mubr.msk.f32.vlgmr.msra.gmra.mrb[0].mxu0 %vm255_vm3, %v869_v45 }
  0x3c   : >> { %2247 = vmatpush3.msra.mxu0 %v2054_v41  ;;  %2248 = vmatprep.mubr.msk.f32.mxu0 %vm255_vm3, %v955_v46 }
  0x43   : >> { %2249 = vmatmul.mubr.msk.f32.vlgmr.msra.gmra.mrb[0].mxu0 %vm255_vm3, %v957_v48 }
 0x10d   : >> { %v2225_v49 = vpop.f32.mrb[0].mxu1 }
 0x10e   : >> { %v583_v50 = vpop.f32.mrb[1].mxu1 }
 0x116   : >> { %v2250_v51 = vpop.f32.mrb[0].mxu0 }
 0x117   : >> { %v2422_v53 = vadd.f32 %v2250_v51, %v2225_v49  ;;  %v1028_v54 = vpop.f32.mrb[1].mxu0 }
 0x118   : >> { %v2423_v55 = vadd.f32 %v1028_v54, %v583_v50 }
 0x119   : >> { %v1047_v56 = vadd.f32 %v2422_v53, %v2057_v52 }
 0x11a   : >> { %v1046_v57 = vadd.f32 %v2423_v55, %v2057_v52 }
 0x11b   : >> { %v1049_v58 = vmax.f32 %v1047_v56, 0.0 }
 0x11c   : >> { %v1048_v59 = vmax.f32 %v1046_v57, 0.0  ;;  %236 = sbr.rel (!%p234_p11) target bundleno = 26 (0x1a), region = 114 }
 0x11d   : >> { %v1051_v60 = vrot.slane %v1049_v58, 7 }
 0x11e   : >> { %v1055_v61 = vrot.slane %v1048_v59, 7 }
 0x120   : >> { %v1056_v62 = vsel %vm1054_vm5, %v1055_v61, %v1051_v60  ;;  %v1059_v63 = vsel %vm1054_vm5, %v1051_v60, %v1055_v61 }
 0x121   : >> { %2058 = vst.msk [vmem:[%s1968_s15 + $0x18] sm:$0xff] %vm223_vm0, %v1059_v63  ;;  %2059 = vst.msk [vmem:[%s1968_s15 + $0x20] sm:$0xff] %vm223_vm0, %v1056_v62 }
 0x122   : >> { %2060 = vst.msk [vmem:[%s1968_s15 + $0x28] sm:$0x3] %vm226_vm1, %v1059_v63 }
 0x123 LB: >> { %v2061_v0 = vld [vmem:[%s3033_s3 + $0x20] sm:$0xff]  ;;  %v2062_v1 = vld [vmem:[%s3033_s3 + $0x28] sm:$0xff]  ;;  %v2063_v5 = vld [vmem:[%s3033_s3 + $0x30] sm:$0xff]  ;;  %s1070_s26 = smul.u32 24, %s2591_s16  ;;  %s2118_s13 = sshll.u32 %s2591_s16, 4  ;;  %s2591_s16 = sphi %s2787_s16, %s1069_s16  }
 0x124   : >> { %v2084_v2 = vld [vmem:[%s3033_s3 + $0x80] sm:$0xff]  ;;  %v2350_v3 = vpack.c.bf16 %v2062_v1, %v2061_v0  ;;  %v2085_v4 = vld [vmem:[%s3033_s3 + $0x88] sm:$0xff]  ;;  %v2064_v6 = vld [vmem:[%s3033_s3 + $0x38] sm:$0xff]  ;;  %s1909_s10 = scalar_lea.vmem %s217_s12, %s2118_s13 [#allocation3]  ;;  %s1069_s16 = sadd.s32 1, %s2591_s16  }
 0x125   : >> { %v2382_v7 = vpack.c.bf16 %v2085_v4, %v2084_v2  ;;  %v2354_v8 = vpack.c.bf16 %v2064_v6, %v2063_v5  ;;  %v2086_v9 = vld [vmem:[%s3033_s3 + $0x90] sm:$0xff]  ;;  %v2087_v10 = vld [vmem:[%s3033_s3 + $0x98] sm:$0xff]  ;;  %v1075_v12 = vld [vmem:[%s3033_s3] sm:$0xff]  ;;  %s2835_s11 = scalar_lea.vmem [#allocation2], %s1070_s26  ;;  %p1066_p12 = scmp.ge.s32.totalorder %s1069_s16, 16  }
 0x126   : >> { %2351 = vmatprep.subr.bf16.mxu1 %v2350_v3  ;;  %v2386_v11 = vpack.c.bf16 %v2087_v10, %v2086_v9  ;;  %v1076_v13 = vld [vmem:[%s3033_s3 + $0x8] sm:$0xff]  ;;  %v2090_v14 = vld [vmem:[%s3033_s3 + $0xa0] sm:$0xff]  ;;  %v1077_v16 = vld [vmem:[%s3033_s3 + $0x10] sm:$0xff]  ;;  %s2124_s9 = sshll.u32 (%p1066_p12), %s2648_s22, 12  ;;  %s2989_s16 = scalar_lea.sflag (%p1066_p12), [#allocation4], %s215_s30 }
 0x127   : >> { %2383 = vmatprep.subr.bf16.mxu0 %v2382_v7  ;;  %2353 = vmatpush3.bf16.msra.mxu1 %v2350_v3  ;;  %v2091_v15 = vld [vmem:[%s3033_s3 + $0xa8] sm:$0xff]  ;;  %v1078_v17 = vld [vmem:[%s3033_s3 + $0x18] sm:$0xff]  ;;  %v2358_v26 = vpack.c.bf16 %v1076_v13, %v1075_v12  ;;  %v2092_v31 = vld [vmem:[%s3033_s3 + $0xb0] sm:$0xff]  ;;  %s2981_s8 = scalar_lea.hbm (%p1066_p12), %s3035_s5, %s2124_s9  ;;  %s2594_s22 = smov (%p1066_p12), [#allocation3]  }
 0x128   : >> { %2385 = vmatpush3.bf16.msra.mxu0 %v2382_v7  ;;  %2355 = vmatprep.subr.bf16.mxu1 %v2354_v8  ;;  %v2390_v30 = vpack.c.bf16 %v2091_v15, %v2090_v14  ;;  %v2093_v32 = vld [vmem:[%s3033_s3 + $0xb8] sm:$0xff]  ;;  %v2362_v39 = vpack.c.bf16 %v1078_v17, %v1077_v16  ;;  %v2069_v42 = vld [vmem:[%s3033_s3 + $0x40] sm:$0xff]  ;;  %v2070_v43 = vld [vmem:[%s3033_s3 + $0x48] sm:$0xff]  ;;  %s2517_s23 = sshll.u32 (%p1066_p12), %s2594_s22, 4  ;;  %s2518_s23 = int_to_ptr.vmem [resolvable:$false] %s2517_s23 }
 0x129   : >> { %v2838_v18 = vld [vmem:[%s2835_s11] sm:$0xff]  ;;  %v2841_v19 = vld [vmem:[%s2835_s11 + $0x8] sm:$0xff]  ;;  %v2844_v20 = vld [vmem:[%s2835_s11 + $0x18] sm:$0xff]  ;;  %2387 = vmatprep.subr.bf16.mxu0 %v2386_v11  ;;  %v2394_v41 = vpack.c.bf16 %v2093_v32, %v2092_v31  ;;  %v2366_v47 = vpack.c.bf16 %v2070_v43, %v2069_v42  ;;  %s2519_s25 = scalar_lea.vmem (%p1066_p12), %s2518_s23, 8192 }
 0x12a   : >> { %v1088_v21 = vrot.slane %v2838_v18, 1  ;;  %v1089_v22 = vrot.slane %v2841_v19, 1  ;;  %v2849_v23 = vld [vmem:[%s2835_s11 + $0x20] sm:$0xff]  ;;  %v1443_v24 = vrot.slane %v2844_v20, 1  ;;  %v2853_v25 = vld [vmem:[%s2835_s11 + $0x10] sm:$0x3] }
 0x12b   : >> { %v1444_v27 = vrot.slane %v2849_v23, 1  ;;  %v1091_v28 = vrot.slane %v2853_v25, 1  ;;  %v2077_v29 = vld [vmem:[%s2835_s11 + $0x28] sm:$0x3]  ;;  %2357 = vmatpush3.bf16.msra.mxu1 %v2354_v8  ;;  %v1534_v35 = vrot.slane %v2844_v20, 2  ;;  %v1535_v36 = vrot.slane %v2849_v23, 2 }
 0x12c   : >> { %v1090_v33 = vsel %vm249_vm2, %v1088_v21, %v1089_v22  ;;  %v1446_v34 = vrot.slane %v2077_v29, 1  ;;  %2389 = vmatpush3.bf16.msra.mxu0 %v2386_v11  ;;  %2359 = vmatprep.subr.bf16.mxu1 %v2358_v26  ;;  %v2099_v44 = vld [vmem:[%s3033_s3 + $0xc0] sm:$0xff]  ;;  %v2100_v45 = vld [vmem:[%s3033_s3 + $0xc8] sm:$0xff]  ;;  %v1537_v48 = vrot.slane %v2077_v29, 2  ;;  %v2071_v50 = vld [vmem:[%s3033_s3 + $0x50] sm:$0xff]  ;;  %v1257_v54 = vrot.slane %v2838_v18, 2 }
 0x12d   : >> { %2259 = vmatprep.mubr.msk.f32.mxu1 %vm223_vm0, %v1090_v33  ;;  %v1445_v37 = vsel %vm249_vm2, %v1443_v24, %v1444_v27  ;;  %v1092_v38 = vsel %vm249_vm2, %v1089_v22, %v1091_v28  ;;  %2391 = vmatprep.subr.bf16.mxu0 %v2390_v30  ;;  %v1536_v46 = vsel %vm416_vm4, %v1534_v35, %v1535_v36  ;;  %v2072_v51 = vld [vmem:[%s3033_s3 + $0x58] sm:$0xff]  ;;  %v2101_v52 = vld [vmem:[%s3033_s3 + $0xd0] sm:$0xff]  ;;  %v1258_v55 = vrot.slane %v2841_v19, 2  ;;  %v2078_v59 = vld [vmem:[%s3033_s3 + $0x60] sm:$0xff] }
 0x12e   : >> { %2303 = vmatprep.mubr.msk.f32.mxu0 %vm223_vm0, %v1445_v37  ;;  %v1447_v40 = vsel %vm249_vm2, %v1444_v27, %v1446_v34  ;;  %2260 = vmatmul.mubr.msk.f32.vlgmr.msra.gmra.mrb[0].mxu1 %vm223_vm0, %v1092_v38  ;;  %v2398_v49 = vpack.c.bf16 %v2100_v45, %v2099_v44  ;;  %v2102_v53 = vld [vmem:[%s3033_s3 + $0xd8] sm:$0xff]  ;;  %v1538_v56 = vsel %vm416_vm4, %v1535_v36, %v1537_v48  ;;  %v2079_v60 = vld [vmem:[%s3033_s3 + $0x68] sm:$0xff]  ;;  %v2105_v62 = vld [vmem:[%s3033_s3 + $0xe0] sm:$0xff]  ;;  %v1260_v1 = vrot.slane %v2853_v25, 2 }
 0x12f   : >> { %2304 = vmatmul.mubr.msk.f32.vlgmr.msra.gmra.mrb[0].mxu0 %vm223_vm0, %v1447_v40  ;;  %2361 = vmatpush3.bf16.msra.mxu1 %v2358_v26  ;;  %v2370_v57 = vpack.c.bf16 %v2072_v51, %v2071_v50  ;;  %v2402_v58 = vpack.c.bf16 %v2102_v53, %v2101_v52  ;;  %v1259_v61 = vsel %vm416_vm4, %v1257_v54, %v1258_v55  ;;  %v2106_v63 = vld [vmem:[%s3033_s3 + $0xe8] sm:$0xff]  ;;  %v2096_v0 = vld [vmem:[%s2835_s11 + $0x30] sm:$0xff]  ;;  %v2081_v5 = vld [vmem:[%s3033_s3 + $0x78] sm:$0xff] }
 0x130   : >> { %2393 = vmatpush3.bf16.msra.mxu0 %v2390_v30  ;;  %2363 = vmatprep.subr.bf16.mxu1 %v2362_v39  ;;  %v2374_v2 = vpack.c.bf16 %v2079_v60, %v2078_v59  ;;  %v2406_v3 = vpack.c.bf16 %v2106_v63, %v2105_v62  ;;  %v2080_v4 = vld [vmem:[%s3033_s3 + $0x70] sm:$0xff]  ;;  %v2097_v6 = vld [vmem:[%s2835_s11 + $0x38] sm:$0xff]  ;;  %v1261_v9 = vsel %vm416_vm4, %v1258_v55, %v1260_v1  ;;  %v1720_v10 = vrot.slane %v2096_v0, 1  ;;  %v2098_v14 = vld [vmem:[%s2835_s11 + $0x40] sm:$0x3]  ;;  %s1926_s11 = sshll.u32 (%p1066_p12), %s217_s12, 4  ;;  %s2985_s11 = int_to_ptr.vmem [resolvable:$true] %s1926_s11 }
 0x131   : >> { %2395 = vmatprep.subr.bf16.mxu0 %v2394_v41  ;;  %2270 = vmatprep.mubr.msk.f32.mxu1 %vm223_vm0, %v2838_v18  ;;  %v2107_v7 = vld [vmem:[%s3033_s3 + $0xf0] sm:$0xff]  ;;  %v2108_v8 = vld [vmem:[%s3033_s3 + $0xf8] sm:$0xff]  ;;  %v1721_v11 = vrot.slane %v2097_v6, 1  ;;  %v2378_v12 = vpack.c.bf16 %v2081_v5, %v2080_v4  ;;  %v2111_v15 = vld [vmem:[%s3033_s3 + $0x100] sm:$0xff]  ;;  %v1723_v18 = vrot.slane %v2098_v14, 1  ;;  %v1811_v21 = vrot.slane %v2096_v0, 2  ;;  %p2520_p2 = scmp.lt.s32.totalorder (%p1066_p12), %s2985_s11, %s2518_s23 }
 0x132   : >> { %2314 = vmatprep.mubr.msk.f32.mxu0 %vm223_vm0, %v1536_v46  ;;  %v2410_v13 = vpack.c.bf16 %v2108_v8, %v2107_v7  ;;  %v2112_v16 = vld [vmem:[%s3033_s3 + $0x108] sm:$0xff]  ;;  %v1812_v22 = vrot.slane %v2097_v6, 2  ;;  %v2113_v24 = vld [vmem:[%s3033_s3 + $0x110] sm:$0xff]  ;;  %v2114_v25 = vld [vmem:[%s3033_s3 + $0x118] sm:$0xff]  ;;  %v1814_v28 = vrot.slane %v2098_v14, 2  ;;  %s2513_s17 = scalar_lea.vmem (%p1066_p12), %s2985_s11, 4096 }
 0x133   : >> { %2365 = vmatpush3.bf16.msra.mxu1 %v2362_v39  ;;  %v1722_v17 = vsel %vm249_vm2, %v1720_v10, %v1721_v11  ;;  %v1724_v26 = vsel %vm249_vm2, %v1721_v11, %v1723_v18  ;;  %v2418_v27 = vpack.c.bf16 %v2114_v25, %v2113_v24  ;;  %p2514_p13 = scmp.ne.s32.totalorder (%p1066_p12), %s2985_s11, %s2513_s17  ;;  %p2521_p3 = scmp.lt.s32.totalorder (%p1066_p12), %s2519_s25, %s2513_s17 }
 0x134   : >> { %2397 = vmatpush3.bf16.msra.mxu0 %v2394_v41  ;;  %2367 = vmatprep.subr.bf16.mxu1 %v2366_v47  ;;  %v1815_v29 = vsel %vm416_vm4, %v1812_v22, %v1814_v28 }
 0x135   : >> { %2399 = vmatprep.subr.bf16.mxu0 %v2398_v49  ;;  %p2515_p0 = pnand (%p1066_p12), %p2514_p13, %p2665_p5  ;;  %p2522_p4 = por (%p1066_p12), %p2521_p3, %p2520_p2 }
 0x136   : >> { %2271 = vmatmul.mubr.msk.f32.vlgmr.msra.gmra.mrb[0].mxu1 %vm223_vm0, %v2841_v19  ;;  %v2414_v19 = vpack.c.bf16 %v2112_v16, %v2111_v15 }
 0x137   : >> { %2315 = vmatmul.mubr.msk.f32.vlgmr.msra.gmra.mrb[0].mxu0 %vm223_vm0, %v1538_v56  ;;  %2369 = vmatpush3.bf16.msra.mxu1 %v2366_v47  ;;  %p2516_p1 = pneg (%p1066_p12), %p2515_p0 }
 0x138   : >> { %2401 = vmatpush3.bf16.msra.mxu0 %v2398_v49  ;;  %2371 = vmatprep.subr.bf16.mxu1 %v2370_v57 }
 0x139   : >> { %2403 = vmatprep.subr.bf16.mxu0 %v2402_v58  ;;  %2281 = vmatprep.mubr.msk.f32.mxu1 %vm223_vm0, %v1259_v61  ;;  %p2523_p7 = pnand (%p1066_p12), %p2522_p4, %p2516_p1 }
 0x13a   : >> { %2325 = vmatprep.mubr.msk.f32.mxu0 %vm223_vm0, %v2096_v0 }
 0x13b   : >> { %2373 = vmatpush3.bf16.msra.mxu1 %v2370_v57 }
 0x13c   : >> { %2405 = vmatpush3.bf16.msra.mxu0 %v2402_v58  ;;  %2375 = vmatprep.subr.bf16.mxu1 %v2374_v2 }
 0x13d   : >> { %2407 = vmatprep.subr.bf16.mxu0 %v2406_v3 }
 0x13e   : >> { %2282 = vmatmul.mubr.msk.f32.vlgmr.msra.gmra.mrb[0].mxu1 %vm223_vm0, %v1261_v9 }
 0x13f   : >> { %2326 = vmatmul.mubr.msk.f32.vlgmr.msra.gmra.mrb[0].mxu0 %vm223_vm0, %v2097_v6  ;;  %2377 = vmatpush3.bf16.msra.mxu1 %v2374_v2 }
 0x140   : >> { %2409 = vmatpush3.bf16.msra.mxu0 %v2406_v3  ;;  %2379 = vmatprep.subr.bf16.mxu1 %v2378_v12 }
 0x141   : >> { %2411 = vmatprep.subr.bf16.mxu0 %v2410_v13  ;;  %2292 = vmatprep.mubr.msk.f32.mxu1 %vm223_vm0, %v2844_v20  ;;  %v1813_v20 = vsel %vm416_vm4, %v1811_v21, %v1812_v22 }
 0x142   : >> { %2336 = vmatprep.mubr.msk.f32.mxu0 %vm223_vm0, %v1722_v17 }
 0x143   : >> { %2381 = vmatpush3.bf16.msra.mxu1 %v2378_v12 }
 0x144   : >> { %2413 = vmatpush3.bf16.msra.mxu0 %v2410_v13 }
 0x145   : >> { %2415 = vmatprep.subr.bf16.mxu0 %v2414_v19 }
 0x146   : >> { %2293 = vmatmul.mubr.msk.f32.vlgmr.msra.gmra.mrb[0].mxu1 %vm223_vm0, %v2849_v23  ;;  %v2117_v23 = vld [vmem:[%s3034_s4] ss:$0 sm:$0xff] }
 0x147   : >> { %2337 = vmatmul.mubr.msk.f32.vlgmr.msra.gmra.mrb[0].mxu0 %vm223_vm0, %v1724_v26 }
 0x148   : >> { %2417 = vmatpush3.bf16.msra.mxu0 %v2414_v19  ;;  %2347 = vmatprep.mubr.msk.f32.mxu0 %vm223_vm0, %v1813_v20 }
 0x149   : >> { %2419 = vmatprep.subr.bf16.mxu0 %v2418_v27 }
 0x14c   : >> { %2421 = vmatpush3.bf16.msra.mxu0 %v2418_v27 }
 0x14f   : >> { %2348 = vmatmul.mubr.msk.f32.vlgmr.msra.gmra.mrb[0].mxu0 %vm223_vm0, %v1815_v29 }
 0x219   : >> { %v2294_v30 = vpop.f32.mrb[0].mxu1 }
 0x21a   : >> { %v1426_v31 = vpop.f32.mrb[1].mxu1 }
 0x222   : >> { %v2349_v32 = vpop.f32.mrb[0].mxu0 }
 0x223   : >> { %v2438_v33 = vadd.f32 %v2349_v32, %v2294_v30  ;;  %v1886_v34 = vpop.f32.mrb[1].mxu0 }
 0x224   : >> { %v2439_v35 = vadd.f32 %v1886_v34, %v1426_v31  ;;  %1068 = sbr.rel (!%p1066_p12) target bundleno = 291 (0x123), region = 125 }
 0x225   : >> { %v1905_v36 = vadd.f32 %v2438_v33, %v2117_v23 }
 0x226   : >> { %v1904_v37 = vadd.f32 %v2439_v35, %v2117_v23 }
 0x227   : >> { %v1907_v38 = vmax.f32 %v1905_v36, 0.0 }
 0x228   : >> { %v1906_v39 = vmax.f32 %v1904_v37, 0.0 }
 0x229   : >> { %1911 = vst.msk [vmem:[%s1909_s10 + $0x8] sm:$0xff] %vm223_vm0, %v1907_v38 }
 0x22a   : >> { %1910 = vst.msk [vmem:[%s1909_s10] sm:$0xff] %vm223_vm0, %v1906_v39 }
 0x22b   : > { %2526 = shalt.err (!%p2523_p7)
}
 0x22c   : > { %s2527_s30 = scalar_lea.hbm %s2981_s8, 4096  ;;  %s2531_s7 = scalar_lea.hbm %s3035_s5, 8192 }
 0x22d   : > { %p2528_p8 = scmp.ne.s32.totalorder %s2981_s8, %s2527_s30  ;;  %p2532_p11 = scmp.lt.u32.totalorder %s2981_s8, %s3035_s5 }
 0x22e   : > { %p2533_p12 = scmp.lt.u32.totalorder %s2531_s7, %s2527_s30  ;;  %p2535_p0 = scmp.lt.u32.totalorder %s2527_s30, %s2981_s8 }
 0x22f   : > { %p2529_p9 = pnand %p2528_p8, %p2665_p5 }
 0x230   : > { %p2534_p13 = por %p2533_p12, %p2532_p11 }
 0x231   : > { %p2530_p10 = pneg %p2529_p9 }
 0x232   : > { %p2536_p1 = por %p2535_p0, %p2534_p13 }
 0x234   : > { %p2537_p2 = pnand %p2536_p1, %p2530_p10 }
 0x236   : > { %2540 = shalt.err (!%p2537_p2)
}
 0x237   : > { %s2595_s10 = smov 128   ;;  %s2596_s9 = smov 8  }
 0x238   : > { %2455 = dma.vmem_to_hbm [thread:$0]  (%p2665_p5), %s2985_s11, 4096, %s2981_s8, %s2989_s16, %s2595_s10, %s2595_s10, %s2596_s9  }
 0x239 PF: > { %p2461_p3 = scmp.ge.s32.totalorder %s2583_s21, 2  ;;  %s1941_s14 = sand.u32 1, %s2571_s18  }
 0x23a   : > { %s1942_s15 = scalar_lea.sflag [#allocation4], %s1941_s14 }
 0x23b   : > { %p2458_p4 = pnand %p2461_p3, %p2669_p6 }
 0x23d   : > { %2566 = dma.done.wait (!%p2458_p4), %s1942_s15, 4096  }
 0x23e   : > { %2568 = vsyncadd (!%p2458_p4), %s1942_s15, 4294963200  ;;  %p15_p7 = scmp.ge.s32.totalorder %s2652_s24, 4   ;;  %s3038_s18 = smov %s2575_s19 }
 0x23f   : > { %s3039_s19 = smov %s2579_s20  ;;  %s3040_s20 = smov %s2663_s27 }
 0x240   : > { %s3041_s21 = smov %s2652_s24  ;;  %17 = sbr.rel (!%p15_p7) target bundleno = 3 (0x3), region = 136 }
 0x247   :  { %1947 = vsyncpa [#allocation4], 1 }
 0x248   :  { %1949 = vsyncpa [#allocation4 + $0x1], 1 }

</bundles_post_ra>
